<compile_context>
chip_gen: v6e
topology: v6e:2x2x1
jax: 0.10.0
libtpu: 0.0.40
codegen_flags: <defaults>
</compile_context>

<pallas_src>
import functools

import jax
import jax.numpy as jnp
import numpy as np
from jax.experimental import pallas as pl
from jax.experimental.pallas import tpu as pltpu

_BN_EPS = 1e-5


def _round_up(x, m):
    return (x + m - 1) // m * m


def _geometry(n, h, w):
    """Zero-haloed flat layout: per image (H+2) rows x (W+1) cols (one zero
    row above/below, one zero column on the right).  Flat tap offset for
    (ky, kx) is ky*(W+1)+kx and every out-of-image read lands on a zero."""
    wp, hp = w + 1, h + 2
    core = n * hp * wp                          # positions carrying the layout
    r_out = _round_up(core, 128)                # lane-dense output width
    halo = max(128, _round_up(w + 2, 128))      # >= max |tap offset| = W+2
    total = halo + r_out + halo                 # full flat buffer length
    offsets = tuple(ky * wp + kx for ky in (-1, 0, 1) for kx in (-1, 0, 1))
    return wp, hp, core, r_out, halo, total, offsets


def _valid_mask(n, h, w, core, r_out):
    """(1, r_out) f32 mask: 1 where the flat position is a real pixel."""
    wp, hp = w + 1, h + 2
    q = np.arange(r_out)
    qq = q % (hp * wp)
    row, col = qq // wp, qq % wp
    ok = (q < core) & (row >= 1) & (row <= h) & (col < w)
    return ok.astype(np.float32)[None, :]


def _double_conv_kernel(x_ref, mask_ref, w1_ref, g1_ref, b1_ref,
                        w2_ref, g2_ref, b2_ref, out_ref,
                        stk1_ref, y1_ref, stk2_ref,
                        *, offsets, pad_front, r_data):
    """Fused (conv3x3 SAME -> BN(batch stats) -> ReLU) x 2.

    Layouts (lanes = flattened zero-haloed spatial, sublanes = channels):
      x_ref    : (Cin,  L)      bf16, zero-haloed flat input
      mask_ref : (1,    R)      f32, 1 at real pixels, 0 at halo positions
      w*_ref   : (Cout, 9*Cin)  bf16, tap-major flattened 3x3 weights
      g*,b*    : (C, 1)         f32, BN gamma / beta
      out_ref  : (Cout, R)      f32 (halo lanes sliced off by the wrapper)
      stk*_ref : (9*C,  R)      bf16 scratch: stacked shifted taps (im2col)
      y1_ref   : (Cmid, L)      bf16 scratch: zero-haloed stage-1 activation
    """
    r_out = out_ref.shape[1]
    cin = x_ref.shape[0]
    cmid = y1_ref.shape[0]
    mask = mask_ref[...]                                   # (1, R) f32
    inv_n = 1.0 / r_data

    def stack_taps(src_ref, stk_ref, c):
        # im2col along sublanes: tap t is the flat layout shifted by a static
        # offset; halo zeros in `src_ref` implement SAME padding for free.
        for t, off in enumerate(offsets):
            s = pad_front + off                            # static int
            stk_ref[t * c:(t + 1) * c, :] = src_ref[:, s:s + r_out]

    def bn_relu(acc, g_ref, b_ref):
        # Train-mode BN over the batch.  Halo lanes are excluded via `mask`;
        # sum and sum-of-squares both come from the single masked pass `m`.
        m = acc * mask
        mean = jnp.sum(m, axis=1, keepdims=True) * inv_n
        mean_sq = jnp.sum(m * m, axis=1, keepdims=True) * inv_n
        var = jnp.maximum(mean_sq - mean * mean, 0.0)
        scale = jax.lax.rsqrt(var + _BN_EPS) * g_ref[...]  # (C, 1) f32
        shift = b_ref[...] - mean * scale
        return jnp.maximum(acc * scale + shift, 0.0)

    # ---- stage 1: conv3x3 -> BN -> ReLU (single K = 9*Cin matmul) ----
    stack_taps(x_ref, stk1_ref, cin)
    acc1 = jnp.dot(w1_ref[...], stk1_ref[...],
                   preferred_element_type=jnp.float32)     # (Cmid, R) f32
    y1 = bn_relu(acc1, g1_ref, b1_ref) * mask              # zero halo lanes

    # Stage-1 activation stays in VMEM: rebuild the zero-haloed flat layout
    # in a bf16 scratch so stage-2 taps are again plain offset windows.
    y1_ref[...] = jnp.zeros(y1_ref.shape, y1_ref.dtype)
    y1_ref[:, pad_front:pad_front + r_out] = y1.astype(y1_ref.dtype)

    # ---- stage 2: conv3x3 -> BN -> ReLU (single K = 9*Cmid matmul) ----
    stack_taps(y1_ref, stk2_ref, cmid)
    acc2 = jnp.dot(w2_ref[...], stk2_ref[...],
                   preferred_element_type=jnp.float32)     # (Cout, R) f32
    out_ref[...] = bn_relu(acc2, g2_ref, b2_ref)           # lane-dense store


def init_double_conv_params(key, in_channels, out_channels, mid_channels=None):
    """Deterministic init matching the PyTorch module's parameter shapes."""
    if not mid_channels:
        mid_channels = out_channels
    params = {}
    for idx, (cin, cout) in enumerate([(in_channels, mid_channels),
                                       (mid_channels, out_channels)]):
        key, kw, kb = jax.random.split(key, 3)
        fan_in = cin * 3 * 3
        bound = 1.0 / np.sqrt(fan_in)            # PyTorch default conv bound
        params[f"w{idx}"] = jax.random.uniform(
            kw, (3, 3, cin, cout), jnp.float32, -bound, bound)
        # Conv bias kept for PyTorch parameter parity but NOT fed to the
        # kernel: train-mode BN cancels it exactly.
        params[f"b{idx}"] = jax.random.uniform(
            kb, (cout,), jnp.float32, -bound, bound)
        params[f"gamma{idx}"] = jnp.ones((cout,), jnp.float32)   # BN weight
        params[f"beta{idx}"] = jnp.zeros((cout,), jnp.float32)   # BN bias
    return params


@jax.jit
def double_conv(x_nchw, params):
    """Forward pass of DoubleConv.  Input/output are NCHW like PyTorch."""
    n, cin, h, w = x_nchw.shape
    cmid = params["w0"].shape[-1]
    cout = params["w1"].shape[-1]
    wp, hp, core, r_out, pad_front, total, offsets = _geometry(n, h, w)

    # NCHW -> zero-haloed flat (Cin, total): channels on sublanes, padded
    # flattened spatial on lanes; bf16 operands for the MXU.
    x = jnp.transpose(x_nchw, (1, 0, 2, 3)).astype(jnp.float32)
    x = jnp.pad(x, ((0, 0), (0, 0), (1, 1), (0, 1))).reshape(cin, core)
    x = jnp.pad(x, ((0, 0), (pad_front, total - pad_front - core)))
    x = x.astype(jnp.bfloat16)

    mask = jnp.asarray(_valid_mask(n, h, w, core, r_out))    # static geometry

    def flat_w(wt):   # (3,3,Ci,Co) HWIO -> (Co, 9*Ci), tap-major, bf16
        ci, co = wt.shape[2], wt.shape[3]
        return (wt.astype(jnp.bfloat16).reshape(9, ci, co)
                .transpose(2, 0, 1).reshape(co, 9 * ci))

    w1 = flat_w(params["w0"])
    w2 = flat_w(params["w1"])
    g1 = params["gamma0"].reshape(cmid, 1).astype(jnp.float32)
    b1 = params["beta0"].reshape(cmid, 1).astype(jnp.float32)
    g2 = params["gamma1"].reshape(cout, 1).astype(jnp.float32)
    b2 = params["beta1"].reshape(cout, 1).astype(jnp.float32)

    vmem = pl.BlockSpec(memory_space=pltpu.MemorySpace.VMEM)
    out_flat = pl.pallas_call(
        functools.partial(_double_conv_kernel, offsets=offsets,
                          pad_front=pad_front, r_data=n * h * w),
        out_shape=jax.ShapeDtypeStruct((cout, r_out), jnp.float32),
        in_specs=[vmem] * 8,
        out_specs=vmem,
        scratch_shapes=[pltpu.VMEM((9 * cin, r_out), jnp.bfloat16),
                        pltpu.VMEM((cmid, total), jnp.bfloat16),
                        pltpu.VMEM((9 * cmid, r_out), jnp.bfloat16)],
        # No vmem_limit_bytes: footprint <0.5 MiB, well under the default
        # scoped limit on v5e/v6e/v7x (and 64 MiB would be ALL of v7x's VMEM).
    )(x, mask, w1, g1, b1, w2, g2, b2)

    # Drop halo lanes, unflatten, back to NCHW.
    out = out_flat[:, :core].reshape(cout, n, hp, wp)[:, :, 1:1 + h, :w]
    return jnp.transpose(out, (1, 0, 2, 3))


def _reference_double_conv(x_nchw, params, *, bf16_matmul):
    """Pure-JAX reference (lax.conv WITH conv bias, two-pass BN stats).
    bf16_matmul=True mirrors the kernel's bf16 operands / f32 accumulation."""
    x = jnp.transpose(x_nchw, (0, 2, 3, 1)).astype(jnp.float32)
    for idx in range(2):
        lhs, rhs = x, params[f"w{idx}"].astype(jnp.float32)
        if bf16_matmul:
            lhs, rhs = lhs.astype(jnp.bfloat16), rhs.astype(jnp.bfloat16)
        y = jax.lax.conv_general_dilated(
            lhs, rhs, window_strides=(1, 1), padding="SAME",
            dimension_numbers=("NHWC", "HWIO", "NHWC"),
            preferred_element_type=jnp.float32)
        y = y + params[f"b{idx}"]            # cancelled by train-mode BN below
        mean = jnp.mean(y, axis=(0, 1, 2), keepdims=True)
        var = jnp.mean((y - mean) ** 2, axis=(0, 1, 2), keepdims=True)
        y = (y - mean) * jax.lax.rsqrt(var + _BN_EPS)
        y = y * params[f"gamma{idx}"] + params[f"beta{idx}"]
        x = jnp.maximum(y, 0.0)
    return jnp.transpose(x, (0, 3, 1, 2))


if __name__ == "__main__":
    key = jax.random.PRNGKey(0)
    kx, kp = jax.random.split(key)

    N, C_IN, C_OUT, H, W = 2, 4, 8, 16, 16
    x = jax.random.normal(kx, (N, C_IN, H, W), jnp.float32)   # NCHW like torch
    params = init_double_conv_params(kp, C_IN, C_OUT)

    out = jax.block_until_ready(double_conv(x, params))
    assert out.shape == (N, C_OUT, H, W), out.shape

    # Tight check vs a reference that matches the kernel's bf16 matmul
    # operands (f32 accumulation, f32 BN everywhere).
    ref_bf16 = jax.block_until_ready(
        _reference_double_conv(x, params, bf16_matmul=True))
    assert jnp.allclose(out, ref_bf16, atol=5e-3, rtol=5e-3), \
        float(jnp.max(jnp.abs(out - ref_bf16)))

    # Looser semantic check vs the full-f32 PyTorch-equivalent reference
    # (difference is bf16 operand rounding only).
    ref_f32 = jax.block_until_ready(
        _reference_double_conv(x, params, bf16_matmul=False))
    assert jnp.allclose(out, ref_f32, atol=1e-1, rtol=1e-1), \
        float(jnp.max(jnp.abs(out - ref_f32)))

    print("KERNEL_OK")
</pallas_src>

<mosaic_0001>
module attributes {stable_mosaic.version = 11 : i64} {
  func.func @_double_conv_kernel(%arg0: memref<4x896xbf16, #tpu.memory_space<vmem>>, %arg1: memref<1x640xf32, #tpu.memory_space<vmem>>, %arg2: memref<8x36xbf16, #tpu.memory_space<vmem>>, %arg3: memref<8x1xf32, #tpu.memory_space<vmem>>, %arg4: memref<8x1xf32, #tpu.memory_space<vmem>>, %arg5: memref<8x72xbf16, #tpu.memory_space<vmem>>, %arg6: memref<8x1xf32, #tpu.memory_space<vmem>>, %arg7: memref<8x1xf32, #tpu.memory_space<vmem>>, %arg8: memref<8x640xf32, #tpu.memory_space<vmem>>, %arg9: memref<36x640xbf16, #tpu.memory_space<vmem>>, %arg10: memref<8x896xbf16, #tpu.memory_space<vmem>>, %arg11: memref<72x640xbf16, #tpu.memory_space<vmem>>) attributes {dimension_semantics = [], scalar_prefetch = 0 : i64, scratch_operands = 3 : i64, tpu.core_type = #tpu.core_type<tc>} {
    %c0 = arith.constant 0 : index
    %c0_0 = arith.constant 0 : index
    %0 = vector.load %arg1[%c0, %c0_0] : memref<1x640xf32, #tpu.memory_space<vmem>>, vector<1x640xf32>
    %c0_1 = arith.constant 0 : index
    %c110 = arith.constant 110 : index
    %1 = vector.load %arg0[%c0_1, %c110] : memref<4x896xbf16, #tpu.memory_space<vmem>>, vector<4x640xbf16>
    %c0_2 = arith.constant 0 : index
    %c0_3 = arith.constant 0 : index
    %2 = vector.load %arg9[%c0_2, %c0_3] : memref<36x640xbf16, #tpu.memory_space<vmem>>, vector<4x640xbf16>
    tpu.vector_store %arg9[%c0_2, %c0_3], %1 {strides = array<i32>} : memref<36x640xbf16, #tpu.memory_space<vmem>>, vector<4x640xbf16>,
    %c0_4 = arith.constant 0 : index
    %c111 = arith.constant 111 : index
    %3 = vector.load %arg0[%c0_4, %c111] : memref<4x896xbf16, #tpu.memory_space<vmem>>, vector<4x640xbf16>
    %c4 = arith.constant 4 : index
    %c0_5 = arith.constant 0 : index
    %4 = vector.load %arg9[%c4, %c0_5] : memref<36x640xbf16, #tpu.memory_space<vmem>>, vector<4x640xbf16>
    tpu.vector_store %arg9[%c4, %c0_5], %3 {strides = array<i32>} : memref<36x640xbf16, #tpu.memory_space<vmem>>, vector<4x640xbf16>,
    %c0_6 = arith.constant 0 : index
    %c112 = arith.constant 112 : index
    %5 = vector.load %arg0[%c0_6, %c112] : memref<4x896xbf16, #tpu.memory_space<vmem>>, vector<4x640xbf16>
    %c8 = arith.constant 8 : index
    %c0_7 = arith.constant 0 : index
    %6 = vector.load %arg9[%c8, %c0_7] : memref<36x640xbf16, #tpu.memory_space<vmem>>, vector<4x640xbf16>
    tpu.vector_store %arg9[%c8, %c0_7], %5 {strides = array<i32>} : memref<36x640xbf16, #tpu.memory_space<vmem>>, vector<4x640xbf16>,
    %c0_8 = arith.constant 0 : index
    %c127 = arith.constant 127 : index
    %7 = vector.load %arg0[%c0_8, %c127] : memref<4x896xbf16, #tpu.memory_space<vmem>>, vector<4x640xbf16>
    %c12 = arith.constant 12 : index
    %c0_9 = arith.constant 0 : index
    %8 = vector.load %arg9[%c12, %c0_9] : memref<36x640xbf16, #tpu.memory_space<vmem>>, vector<4x640xbf16>
    tpu.vector_store %arg9[%c12, %c0_9], %7 {strides = array<i32>} : memref<36x640xbf16, #tpu.memory_space<vmem>>, vector<4x640xbf16>,
    %c0_10 = arith.constant 0 : index
    %c128 = arith.constant 128 : index
    %9 = vector.load %arg0[%c0_10, %c128] : memref<4x896xbf16, #tpu.memory_space<vmem>>, vector<4x640xbf16>
    %c16 = arith.constant 16 : index
    %c0_11 = arith.constant 0 : index
    %10 = vector.load %arg9[%c16, %c0_11] : memref<36x640xbf16, #tpu.memory_space<vmem>>, vector<4x640xbf16>
    tpu.vector_store %arg9[%c16, %c0_11], %9 {strides = array<i32>} : memref<36x640xbf16, #tpu.memory_space<vmem>>, vector<4x640xbf16>,
    %c0_12 = arith.constant 0 : index
    %c129 = arith.constant 129 : index
    %11 = vector.load %arg0[%c0_12, %c129] : memref<4x896xbf16, #tpu.memory_space<vmem>>, vector<4x640xbf16>
    %c20 = arith.constant 20 : index
    %c0_13 = arith.constant 0 : index
    %12 = vector.load %arg9[%c20, %c0_13] : memref<36x640xbf16, #tpu.memory_space<vmem>>, vector<4x640xbf16>
    tpu.vector_store %arg9[%c20, %c0_13], %11 {strides = array<i32>} : memref<36x640xbf16, #tpu.memory_space<vmem>>, vector<4x640xbf16>,
    %c0_14 = arith.constant 0 : index
    %c144 = arith.constant 144 : index
    %13 = vector.load %arg0[%c0_14, %c144] : memref<4x896xbf16, #tpu.memory_space<vmem>>, vector<4x640xbf16>
    %c24 = arith.constant 24 : index
    %c0_15 = arith.constant 0 : index
    %14 = vector.load %arg9[%c24, %c0_15] : memref<36x640xbf16, #tpu.memory_space<vmem>>, vector<4x640xbf16>
    tpu.vector_store %arg9[%c24, %c0_15], %13 {strides = array<i32>} : memref<36x640xbf16, #tpu.memory_space<vmem>>, vector<4x640xbf16>,
    %c0_16 = arith.constant 0 : index
    %c145 = arith.constant 145 : index
    %15 = vector.load %arg0[%c0_16, %c145] : memref<4x896xbf16, #tpu.memory_space<vmem>>, vector<4x640xbf16>
    %c28 = arith.constant 28 : index
    %c0_17 = arith.constant 0 : index
    %16 = vector.load %arg9[%c28, %c0_17] : memref<36x640xbf16, #tpu.memory_space<vmem>>, vector<4x640xbf16>
    tpu.vector_store %arg9[%c28, %c0_17], %15 {strides = array<i32>} : memref<36x640xbf16, #tpu.memory_space<vmem>>, vector<4x640xbf16>,
    %c0_18 = arith.constant 0 : index
    %c146 = arith.constant 146 : index
    %17 = vector.load %arg0[%c0_18, %c146] : memref<4x896xbf16, #tpu.memory_space<vmem>>, vector<4x640xbf16>
    %c32 = arith.constant 32 : index
    %c0_19 = arith.constant 0 : index
    %18 = vector.load %arg9[%c32, %c0_19] : memref<36x640xbf16, #tpu.memory_space<vmem>>, vector<4x640xbf16>
    tpu.vector_store %arg9[%c32, %c0_19], %17 {strides = array<i32>} : memref<36x640xbf16, #tpu.memory_space<vmem>>, vector<4x640xbf16>,
    %c0_20 = arith.constant 0 : index
    %c0_21 = arith.constant 0 : index
    %19 = vector.load %arg2[%c0_20, %c0_21] : memref<8x36xbf16, #tpu.memory_space<vmem>>, vector<8x36xbf16>
    %c0_22 = arith.constant 0 : index
    %c0_23 = arith.constant 0 : index
    %20 = vector.load %arg9[%c0_22, %c0_23] : memref<36x640xbf16, #tpu.memory_space<vmem>>, vector<36x640xbf16>
    %cst = arith.constant dense<0.000000e+00> : vector<8x640xf32>
    %21 = tpu.matmul %19, %20, %cst {dimension_numbers = #tpu.dot_dimension_numbers<[1], [0], [0], [1], [0, 0, 1, 1], [], []>} : vector<8x36xbf16>, vector<36x640xbf16>, vector<8x640xf32> -> vector<8x640xf32>
    %22 = vector.broadcast %0 : vector<1x640xf32> to vector<8x640xf32>
    %23 = arith.mulf %21, %22 : vector<8x640xf32>
    %cst_24 = arith.constant dense<0.000000e+00> : vector<8xf32>
    %24 = vector.multi_reduction <add>, %23, %cst_24 [1] : vector<8x640xf32> to vector<8xf32>
    %25 = vector.shape_cast %24 : vector<8xf32> to vector<8x1xf32>
    %cst_25 = arith.constant 0.001953125 : f32
    %26 = vector.broadcast %cst_25 : f32 to vector<8x1xf32>
    %27 = arith.mulf %25, %26 : vector<8x1xf32>
    %28 = arith.mulf %23, %23 : vector<8x640xf32>
    %cst_26 = arith.constant dense<0.000000e+00> : vector<8xf32>
    %29 = vector.multi_reduction <add>, %28, %cst_26 [1] : vector<8x640xf32> to vector<8xf32>
    %30 = vector.shape_cast %29 : vector<8xf32> to vector<8x1xf32>
    %cst_27 = arith.constant 0.001953125 : f32
    %31 = vector.broadcast %cst_27 : f32 to vector<8x1xf32>
    %32 = arith.mulf %30, %31 : vector<8x1xf32>
    %33 = arith.mulf %27, %27 : vector<8x1xf32>
    %34 = arith.subf %32, %33 : vector<8x1xf32>
    %cst_28 = arith.constant 0.000000e+00 : f32
    %35 = vector.broadcast %cst_28 : f32 to vector<8x1xf32>
    %36 = arith.maximumf %34, %35 : vector<8x1xf32>
    %cst_29 = arith.constant 9.99999974E-6 : f32
    %37 = vector.broadcast %cst_29 : f32 to vector<8x1xf32>
    %38 = arith.addf %36, %37 : vector<8x1xf32>
    %39 = math.rsqrt %38 : vector<8x1xf32>
    %c0_30 = arith.constant 0 : index
    %c0_31 = arith.constant 0 : index
    %40 = vector.load %arg3[%c0_30, %c0_31] : memref<8x1xf32, #tpu.memory_space<vmem>>, vector<8x1xf32>
    %41 = arith.mulf %39, %40 : vector<8x1xf32>
    %c0_32 = arith.constant 0 : index
    %c0_33 = arith.constant 0 : index
    %42 = vector.load %arg4[%c0_32, %c0_33] : memref<8x1xf32, #tpu.memory_space<vmem>>, vector<8x1xf32>
    %43 = arith.mulf %27, %41 : vector<8x1xf32>
    %44 = arith.subf %42, %43 : vector<8x1xf32>
    %45 = vector.broadcast %41 : vector<8x1xf32> to vector<8x640xf32>
    %46 = arith.mulf %21, %45 : vector<8x640xf32>
    %47 = vector.broadcast %44 : vector<8x1xf32> to vector<8x640xf32>
    %48 = arith.addf %46, %47 : vector<8x640xf32>
    %cst_34 = arith.constant 0.000000e+00 : f32
    %49 = vector.broadcast %cst_34 : f32 to vector<8x640xf32>
    %50 = arith.maximumf %48, %49 : vector<8x640xf32>
    %51 = vector.broadcast %0 : vector<1x640xf32> to vector<8x640xf32>
    %52 = arith.mulf %50, %51 : vector<8x640xf32>
    %cst_35 = arith.constant 0.000000e+00 : bf16
    %53 = vector.broadcast %cst_35 : bf16 to vector<8x896xbf16>
    %c0_36 = arith.constant 0 : index
    %c0_37 = arith.constant 0 : index
    %54 = vector.load %arg10[%c0_36, %c0_37] : memref<8x896xbf16, #tpu.memory_space<vmem>>, vector<8x896xbf16>
    tpu.vector_store %arg10[%c0_36, %c0_37], %53 {strides = array<i32>} : memref<8x896xbf16, #tpu.memory_space<vmem>>, vector<8x896xbf16>,
    %55 = arith.truncf %52 : vector<8x640xf32> to vector<8x640xbf16>
    %c0_38 = arith.constant 0 : index
    %c128_39 = arith.constant 128 : index
    %56 = vector.load %arg10[%c0_38, %c128_39] : memref<8x896xbf16, #tpu.memory_space<vmem>>, vector<8x640xbf16>
    tpu.vector_store %arg10[%c0_38, %c128_39], %55 {strides = array<i32>} : memref<8x896xbf16, #tpu.memory_space<vmem>>, vector<8x640xbf16>,
    %c0_40 = arith.constant 0 : index
    %c110_41 = arith.constant 110 : index
    %57 = vector.load %arg10[%c0_40, %c110_41] : memref<8x896xbf16, #tpu.memory_space<vmem>>, vector<8x640xbf16>
    %c0_42 = arith.constant 0 : index
    %c0_43 = arith.constant 0 : index
    %58 = vector.load %arg11[%c0_42, %c0_43] : memref<72x640xbf16, #tpu.memory_space<vmem>>, vector<8x640xbf16>
    tpu.vector_store %arg11[%c0_42, %c0_43], %57 {strides = array<i32>} : memref<72x640xbf16, #tpu.memory_space<vmem>>, vector<8x640xbf16>,
    %c0_44 = arith.constant 0 : index
    %c111_45 = arith.constant 111 : index
    %59 = vector.load %arg10[%c0_44, %c111_45] : memref<8x896xbf16, #tpu.memory_space<vmem>>, vector<8x640xbf16>
    %c8_46 = arith.constant 8 : index
    %c0_47 = arith.constant 0 : index
    %60 = vector.load %arg11[%c8_46, %c0_47] : memref<72x640xbf16, #tpu.memory_space<vmem>>, vector<8x640xbf16>
    tpu.vector_store %arg11[%c8_46, %c0_47], %59 {strides = array<i32>} : memref<72x640xbf16, #tpu.memory_space<vmem>>, vector<8x640xbf16>,
    %c0_48 = arith.constant 0 : index
    %c112_49 = arith.constant 112 : index
    %61 = vector.load %arg10[%c0_48, %c112_49] : memref<8x896xbf16, #tpu.memory_space<vmem>>, vector<8x640xbf16>
    %c16_50 = arith.constant 16 : index
    %c0_51 = arith.constant 0 : index
    %62 = vector.load %arg11[%c16_50, %c0_51] : memref<72x640xbf16, #tpu.memory_space<vmem>>, vector<8x640xbf16>
    tpu.vector_store %arg11[%c16_50, %c0_51], %61 {strides = array<i32>} : memref<72x640xbf16, #tpu.memory_space<vmem>>, vector<8x640xbf16>,
    %c0_52 = arith.constant 0 : index
    %c127_53 = arith.constant 127 : index
    %63 = vector.load %arg10[%c0_52, %c127_53] : memref<8x896xbf16, #tpu.memory_space<vmem>>, vector<8x640xbf16>
    %c24_54 = arith.constant 24 : index
    %c0_55 = arith.constant 0 : index
    %64 = vector.load %arg11[%c24_54, %c0_55] : memref<72x640xbf16, #tpu.memory_space<vmem>>, vector<8x640xbf16>
    tpu.vector_store %arg11[%c24_54, %c0_55], %63 {strides = array<i32>} : memref<72x640xbf16, #tpu.memory_space<vmem>>, vector<8x640xbf16>,
    %c0_56 = arith.constant 0 : index
    %c128_57 = arith.constant 128 : index
    %65 = vector.load %arg10[%c0_56, %c128_57] : memref<8x896xbf16, #tpu.memory_space<vmem>>, vector<8x640xbf16>
    %c32_58 = arith.constant 32 : index
    %c0_59 = arith.constant 0 : index
    %66 = vector.load %arg11[%c32_58, %c0_59] : memref<72x640xbf16, #tpu.memory_space<vmem>>, vector<8x640xbf16>
    tpu.vector_store %arg11[%c32_58, %c0_59], %65 {strides = array<i32>} : memref<72x640xbf16, #tpu.memory_space<vmem>>, vector<8x640xbf16>,
    %c0_60 = arith.constant 0 : index
    %c129_61 = arith.constant 129 : index
    %67 = vector.load %arg10[%c0_60, %c129_61] : memref<8x896xbf16, #tpu.memory_space<vmem>>, vector<8x640xbf16>
    %c40 = arith.constant 40 : index
    %c0_62 = arith.constant 0 : index
    %68 = vector.load %arg11[%c40, %c0_62] : memref<72x640xbf16, #tpu.memory_space<vmem>>, vector<8x640xbf16>
    tpu.vector_store %arg11[%c40, %c0_62], %67 {strides = array<i32>} : memref<72x640xbf16, #tpu.memory_space<vmem>>, vector<8x640xbf16>,
    %c0_63 = arith.constant 0 : index
    %c144_64 = arith.constant 144 : index
    %69 = vector.load %arg10[%c0_63, %c144_64] : memref<8x896xbf16, #tpu.memory_space<vmem>>, vector<8x640xbf16>
    %c48 = arith.constant 48 : index
    %c0_65 = arith.constant 0 : index
    %70 = vector.load %arg11[%c48, %c0_65] : memref<72x640xbf16, #tpu.memory_space<vmem>>, vector<8x640xbf16>
    tpu.vector_store %arg11[%c48, %c0_65], %69 {strides = array<i32>} : memref<72x640xbf16, #tpu.memory_space<vmem>>, vector<8x640xbf16>,
    %c0_66 = arith.constant 0 : index
    %c145_67 = arith.constant 145 : index
    %71 = vector.load %arg10[%c0_66, %c145_67] : memref<8x896xbf16, #tpu.memory_space<vmem>>, vector<8x640xbf16>
    %c56 = arith.constant 56 : index
    %c0_68 = arith.constant 0 : index
    %72 = vector.load %arg11[%c56, %c0_68] : memref<72x640xbf16, #tpu.memory_space<vmem>>, vector<8x640xbf16>
    tpu.vector_store %arg11[%c56, %c0_68], %71 {strides = array<i32>} : memref<72x640xbf16, #tpu.memory_space<vmem>>, vector<8x640xbf16>,
    %c0_69 = arith.constant 0 : index
    %c146_70 = arith.constant 146 : index
    %73 = vector.load %arg10[%c0_69, %c146_70] : memref<8x896xbf16, #tpu.memory_space<vmem>>, vector<8x640xbf16>
    %c64 = arith.constant 64 : index
    %c0_71 = arith.constant 0 : index
    %74 = vector.load %arg11[%c64, %c0_71] : memref<72x640xbf16, #tpu.memory_space<vmem>>, vector<8x640xbf16>
    tpu.vector_store %arg11[%c64, %c0_71], %73 {strides = array<i32>} : memref<72x640xbf16, #tpu.memory_space<vmem>>, vector<8x640xbf16>,
    %c0_72 = arith.constant 0 : index
    %c0_73 = arith.constant 0 : index
    %75 = vector.load %arg5[%c0_72, %c0_73] : memref<8x72xbf16, #tpu.memory_space<vmem>>, vector<8x72xbf16>
    %c0_74 = arith.constant 0 : index
    %c0_75 = arith.constant 0 : index
    %76 = vector.load %arg11[%c0_74, %c0_75] : memref<72x640xbf16, #tpu.memory_space<vmem>>, vector<72x640xbf16>
    %cst_76 = arith.constant dense<0.000000e+00> : vector<8x640xf32>
    %77 = tpu.matmul %75, %76, %cst_76 {dimension_numbers = #tpu.dot_dimension_numbers<[1], [0], [0], [1], [0, 0, 1, 1], [], []>} : vector<8x72xbf16>, vector<72x640xbf16>, vector<8x640xf32> -> vector<8x640xf32>
    %78 = vector.broadcast %0 : vector<1x640xf32> to vector<8x640xf32>
    %79 = arith.mulf %77, %78 : vector<8x640xf32>
    %cst_77 = arith.constant dense<0.000000e+00> : vector<8xf32>
    %80 = vector.multi_reduction <add>, %79, %cst_77 [1] : vector<8x640xf32> to vector<8xf32>
    %81 = vector.shape_cast %80 : vector<8xf32> to vector<8x1xf32>
    %cst_78 = arith.constant 0.001953125 : f32
    %82 = vector.broadcast %cst_78 : f32 to vector<8x1xf32>
    %83 = arith.mulf %81, %82 : vector<8x1xf32>
    %84 = arith.mulf %79, %79 : vector<8x640xf32>
    %cst_79 = arith.constant dense<0.000000e+00> : vector<8xf32>
    %85 = vector.multi_reduction <add>, %84, %cst_79 [1] : vector<8x640xf32> to vector<8xf32>
    %86 = vector.shape_cast %85 : vector<8xf32> to vector<8x1xf32>
    %cst_80 = arith.constant 0.001953125 : f32
    %87 = vector.broadcast %cst_80 : f32 to vector<8x1xf32>
    %88 = arith.mulf %86, %87 : vector<8x1xf32>
    %89 = arith.mulf %83, %83 : vector<8x1xf32>
    %90 = arith.subf %88, %89 : vector<8x1xf32>
    %cst_81 = arith.constant 0.000000e+00 : f32
    %91 = vector.broadcast %cst_81 : f32 to vector<8x1xf32>
    %92 = arith.maximumf %90, %91 : vector<8x1xf32>
    %cst_82 = arith.constant 9.99999974E-6 : f32
    %93 = vector.broadcast %cst_82 : f32 to vector<8x1xf32>
    %94 = arith.addf %92, %93 : vector<8x1xf32>
    %95 = math.rsqrt %94 : vector<8x1xf32>
    %c0_83 = arith.constant 0 : index
    %c0_84 = arith.constant 0 : index
    %96 = vector.load %arg6[%c0_83, %c0_84] : memref<8x1xf32, #tpu.memory_space<vmem>>, vector<8x1xf32>
    %97 = arith.mulf %95, %96 : vector<8x1xf32>
    %c0_85 = arith.constant 0 : index
    %c0_86 = arith.constant 0 : index
    %98 = vector.load %arg7[%c0_85, %c0_86] : memref<8x1xf32, #tpu.memory_space<vmem>>, vector<8x1xf32>
    %99 = arith.mulf %83, %97 : vector<8x1xf32>
    %100 = arith.subf %98, %99 : vector<8x1xf32>
    %101 = vector.broadcast %97 : vector<8x1xf32> to vector<8x640xf32>
    %102 = arith.mulf %77, %101 : vector<8x640xf32>
    %103 = vector.broadcast %100 : vector<8x1xf32> to vector<8x640xf32>
    %104 = arith.addf %102, %103 : vector<8x640xf32>
    %cst_87 = arith.constant 0.000000e+00 : f32
    %105 = vector.broadcast %cst_87 : f32 to vector<8x640xf32>
    %106 = arith.maximumf %104, %105 : vector<8x640xf32>
    %c0_88 = arith.constant 0 : index
    %c0_89 = arith.constant 0 : index
    %107 = vector.load %arg8[%c0_88, %c0_89] : memref<8x640xf32, #tpu.memory_space<vmem>>, vector<8x640xf32>
    tpu.vector_store %arg8[%c0_88, %c0_89], %106 {strides = array<i32>} : memref<8x640xf32, #tpu.memory_space<vmem>>, vector<8x640xf32>,
    return
  }
}

</mosaic_0001>

<bundles_post_ra>
// kernel: double_conv.1
= control target key start
LH: loop header
LB: loop body
LE: loop exit
PB: predicated region body
PF: predicated region fallthrough
CT: control target
= control target key end

     0   :  { %v39_v0 = vlaneseq  ;;  %v1500_v1 = vmov 1983009808   ;;  %s1501_s29 = smov 110   ;;  %s1502_s30 = smov 127   ;;  %v1509_v25 = vmov 0   ;;  %vm66_vm0 = vcmask 1043456   ;;  %s1953_s0 = inlined_call_operand.vmem [shape: bf16[4,896], index: 0, kind: input, shape index: {}]   ;;  %s1954_s2 = inlined_call_operand.vmem [shape: bf16[8,36], index: 2, kind: input, shape index: {}]   ;;  %s1955_s1 = inlined_call_operand.vmem [shape: f32[1,640], index: 1, kind: input, shape index: {}]   ;;  %s1956_s3 = inlined_call_operand.vmem [shape: f32[8,1], index: 3, kind: input, shape index: {}]   ;;  %s1957_s4 = inlined_call_operand.vmem [shape: f32[8,1], index: 4, kind: input, shape index: {}]   ;;  %s1958_s5 = inlined_call_operand.vmem [shape: bf16[8,72], index: 5, kind: input, shape index: {}]   ;;  %s1959_s6 = inlined_call_operand.vmem [shape: f32[8,1], index: 6, kind: input, shape index: {}]   ;;  %s1960_s7 = inlined_call_operand.vmem [shape: f32[8,1], index: 7, kind: input, shape index: {}]   ;;  %s1961_s8 = inlined_call_operand.vmem [shape: f32[8,640], index: 8, kind: output, shape index: {}]  }
   0x1   :  { %v37_v2 = vunpack.c.l.s4 %v1500_v1  ;;  %v397_v3 = vld [vmem:[%s1953_s0 + $0x2] sm:$0xff]  ;;  %s1503_s11 = smov 112   ;;  %s1504_s12 = smov 111   ;;  %v1469_v19 = vld [vmem:[%s1953_s0 + $0xa] ss:$0 sps:$4 sm:$0xff]   ;;  %757 = vst [vmem:[#allocation3] sm:$0xff] %v1509_v25  ;;  %577 = vmatprep.mubr.bf16.mxu0 %v1509_v25  ;;  %618 = vmatprep.mubr.bf16.mxu1 %v1509_v25 }
   0x2   :  { %v1560_v4 = vshrl.u32 %v39_v0, 7  ;;  %v401_v5 = vcombine.high %v397_v3, %v397_v3  ;;  %1357 = vst.sshfl [vmem:[#allocation2 + $0x28] sm:$0xf pattern:$0x76325410] %v397_v3  ;;  %v258_v7 = vcombine.low %v397_v3, %v397_v3  ;;  %v31_v12 = vld [vmem:[%s1953_s0] sm:$0xff]  ;;  %1463 = vset.pattern.permute.xlu0 %v1509_v25  ;;  %1464 = vset.pattern.permute.xlu1 %v1509_v25 }
   0x3   :  { %v38_v6 = vunpack.c.0.s8 %v37_v2  ;;  %v35_v13 = vcombine.high %v31_v12, %v31_v12  ;;  %v83_v16 = vcombine.low %v31_v12, %v31_v12  ;;  %s1505_s13 = smov 18   ;;  %s1506_s14 = smov 17   ;;  %v1356_v18 = vld.sshfl [vmem:[%s1953_s0 + $0xa] sm:$0x3 pattern:$0x76325410] }
   0x4   :  { %1358 = vst.sshfl [vmem:[#allocation2 + $0x30] sm:$0xf pattern:$0x76325410] %v401_v5  ;;  %253 = vst [vmem:[#allocation2 + $0x38] sm:$0x3] %v1356_v18 }
   0x5   :  { %v41_v8 = vsub.s32 %v38_v6, %v1560_v4  ;;  %s1507_s17 = smov 16   ;;  %s1508_s20 = smov 1   ;;  %v1470_v21 = vld [vmem:[%s1953_s0 + $0xa] ss:$0 sps:$4 sm:$0xff]   ;;  %v1471_v24 = vld [vmem:[%s1953_s0 + $0x8] ss:$0 sps:$4 sm:$0xff]  }
   0x6   :  { %v1360_v22 = vld.sshfl [vmem:[%s1953_s0 + $0xa] sm:$0x33 pattern:$0x76325410]  ;;  %758 = vst [vmem:[#allocation3 + $0x8] sm:$0xff] %v1509_v25  ;;  %759 = vst [vmem:[#allocation3 + $0x10] sm:$0xff] %v1509_v25 }
   0x7   :  { %v408_v9 = vrot.slane %v397_v3, %v41_v8  ;;  %v265_v10 = vrot.slane %v258_v7, %v41_v8  ;;  %v415_v11 = vrot.slane %v401_v5, %v41_v8  ;;  %v42_v14 = vrot.slane %v31_v12, %v41_v8  ;;  %760 = vst [vmem:[#allocation3 + $0x18] sm:$0xf] %v1509_v25  ;;  %v1472_v27 = vld [vmem:[%s1953_s0 + $0x8] ss:$0 sps:$4 sm:$0xff]  }
   0x8   :  { %v49_v15 = vrot.slane %v35_v13, %v41_v8  ;;  %v90_v17 = vrot.slane %v83_v16, %v41_v8  ;;  %v280_v20 = vrot.slane %v1469_v19, %v41_v8  ;;  %v375_v23 = vrot.slane %v1470_v21, %v41_v8  ;;  %v1354_v28 = vld.sshfl [vmem:[%s1953_s0 + $0x8] sm:$0x33 pattern:$0x76325410] }
   0x9   :  { %423 = vrot.lane.b32.xlu0 %v408_v9, %s1501_s29  ;;  %281 = vrot.lane.b32.xlu1 %v265_v10, %s1502_s30  ;;  %v105_v26 = vrot.slane %v1471_v24, %v41_v8  ;;  %v200_v29 = vrot.slane %v1472_v27, %v41_v8  ;;  %vm433_vm1 = vcmask 900096   ;;  %vm291_vm2 = vcmask 1039360  }
   0xa   :  { %vm338_vm3 = vcmask 916480   ;;  %vm386_vm4 = vcmask 908288   ;;  %vm68_vm5 = vcmask 146432   ;;  %vm529_vm6 = vcmask 1041408  }
   0xb   :  { %vm116_vm7 = vcmask 138240   ;;  %vm163_vm8 = vcmask 130048   ;;  %vm211_vm9 = vcmask 7168   ;;  %vm525_vm10 = vcmask 293888  }
   0xc   :  { %vm1511_vm11 = vmmov 0   ;;  %vm1144_vm12 = vcmask 588800  }
   0xd   :  { %425 = vrot.lane.b32.xlu0 %v415_v11, %s1501_s29  ;;  %283 = vrot.lane.b32.xlu1 %v408_v9, %s1502_s30 }
  0x11   :  { %328 = vrot.lane.b32.xlu0 %v408_v9, %s1503_s11  ;;  %330 = vrot.lane.b32.xlu1 %v415_v11, %s1503_s11 }
  0x15   :  { %376 = vrot.lane.b32.xlu0 %v265_v10, %s1504_s12  ;;  %378 = vrot.lane.b32.xlu1 %v408_v9, %s1504_s12 }
  0x19   :  { %57 = vrot.lane.b32.xlu0 %v42_v14, %s1505_s13  ;;  %59 = vrot.lane.b32.xlu1 %v49_v15, %s1505_s13 }
  0x1d   :  { %106 = vrot.lane.b32.xlu0 %v90_v17, %s1506_s14  ;;  %108 = vrot.lane.b32.xlu1 %v42_v14, %s1506_s14 }
  0x21   :  { %153 = vrot.lane.b32.xlu0 %v42_v14, %s1507_s17  ;;  %155 = vrot.lane.b32.xlu1 %v49_v15, %s1507_s17 }
  0x25   :  { %201 = vrot.lane.b32.xlu0 %v90_v17, %s1508_s20  ;;  %203 = vrot.lane.b32.xlu1 %v42_v14, %s1508_s20 }
  0x29   :  { %427 = vrot.lane.b32.xlu0 %v1360_v22, %s1501_s29  ;;  %285 = vrot.lane.b32.xlu1 %v280_v20, %s1502_s30 }
  0x2d   :  { %332 = vrot.lane.b32.xlu0 %v1360_v22, %s1503_s11  ;;  %380 = vrot.lane.b32.xlu1 %v375_v23, %s1504_s12 }
  0x31   :  { %61 = vrot.lane.b32.xlu0 %v1354_v28, %s1505_s13  ;;  %110 = vrot.lane.b32.xlu1 %v105_v26, %s1506_s14 }
  0x35   :  { %157 = vrot.lane.b32.xlu0 %v1354_v28, %s1507_s17  ;;  %205 = vrot.lane.b32.xlu1 %v200_v29, %s1508_s20 }
  0x7b   :  { %v424_v30 = vpop.permute.xlu0 %423  ;;  %v282_v31 = vpop.permute.xlu1 %281 }
  0x7c   :  { %v429_v34 = vrot.slane %v424_v30, 4  ;;  %v287_v35 = vrot.slane %v282_v31, 4 }
  0x7f   :  { %v1619_v32 = vpop.permute.xlu0 %425  ;;  %v1621_v33 = vpop.permute.xlu1 %283 }
  0x80   :  { %v430_v36 = vrot.slane %v1619_v32, 4  ;;  %v288_v37 = vrot.slane %v1621_v33, 4 }
  0x82   :  { %v432_v38 = vsel %vm66_vm0, %v429_v34, %v430_v36  ;;  %v290_v39 = vsel %vm66_vm0, %v287_v35, %v288_v37 }
  0x83   :  { %v434_v40 = vsel %vm433_vm1, %v424_v30, %v432_v38  ;;  %v292_v41 = vsel %vm291_vm2, %v282_v31, %v290_v39  ;;  %v329_v42 = vpop.permute.xlu0 %328  ;;  %v1633_v43 = vpop.permute.xlu1 %330 }
  0x84   :  { %441 = vst [vmem:[#allocation2 + $0x50] sm:$0x33] %v434_v40  ;;  %299 = vst [vmem:[#allocation2 + $0x28] sm:$0xcc] %v292_v41  ;;  %v334_v44 = vrot.slane %v329_v42, 4  ;;  %v335_v45 = vrot.slane %v1633_v43, 4 }
  0x86   :  { %v337_v46 = vsel %vm66_vm0, %v334_v44, %v335_v45 }
  0x87   :  { %v339_v47 = vsel %vm338_vm3, %v329_v42, %v337_v46  ;;  %v377_v48 = vpop.permute.xlu0 %376  ;;  %v1640_v49 = vpop.permute.xlu1 %378 }
  0x88   :  { %346 = vst [vmem:[#allocation2 + $0x3c] sm:$0x33] %v339_v47  ;;  %v382_v50 = vrot.slane %v377_v48, 4  ;;  %v383_v51 = vrot.slane %v1640_v49, 4 }
  0x8a   :  { %v385_v52 = vsel %vm66_vm0, %v382_v50, %v383_v51 }
  0x8b   :  { %v387_v53 = vsel %vm386_vm4, %v377_v48, %v385_v52  ;;  %v58_v54 = vpop.permute.xlu0 %57  ;;  %v1647_v55 = vpop.permute.xlu1 %59  ;;  %v457_v56 = vld [vmem:[#allocation2 + $0x50] sm:$0x33] }
  0x8c   :  { %394 = vst [vmem:[#allocation2 + $0x3c] sm:$0xcc] %v387_v53  ;;  %v63_v57 = vrot.slane %v58_v54, 4  ;;  %v64_v58 = vrot.slane %v1647_v55, 4  ;;  %v1372_v59 = vcombine.high %v457_v56, %v457_v56  ;;  %v1371_v60 = vcombine.low %v457_v56, %v457_v56 }
  0x8e   :  { %v67_v61 = vsel %vm66_vm0, %v63_v57, %v64_v58  ;;  %1376 = vmatprep.subr.msk.bf16.mxu0 %vm529_vm6, %v1372_v59  ;;  %v531_v62 = vsel %vm529_vm6, %v1371_v60, 0 }
  0x8f   :  { %v69_v63 = vsel %vm68_vm5, %v58_v54, %v67_v61  ;;  %556 = vmatpush1.bf16.msra.mxu0 %v531_v62  ;;  %v107_v0 = vpop.permute.xlu0 %106  ;;  %v1656_v1 = vpop.permute.xlu1 %108  ;;  %v1510_v62 = vmov 0.0  }
  0x90   :  { %76 = vst [vmem:[#allocation2] sm:$0x33] %v69_v63  ;;  %v112_v2 = vrot.slane %v107_v0, 4  ;;  %v113_v3 = vrot.slane %v1656_v1, 4 }
  0x92   :  { %v115_v5 = vsel %vm66_vm0, %v112_v2, %v113_v3 }
  0x93   :  { %v117_v6 = vsel %vm116_vm7, %v107_v0, %v115_v5  ;;  %v154_v7 = vpop.permute.xlu0 %153  ;;  %v1663_v8 = vpop.permute.xlu1 %155  ;;  %v1475_v9 = vld [vmem:[#allocation2 + $0x2c] ss:$20 sps:$4 sm:$0xff]   ;;  %v1477_v10 = vld [vmem:[#allocation2 + $0x28] ss:$20 sps:$4 sm:$0xff]  }
  0x94   :  { %124 = vst [vmem:[#allocation2] sm:$0xcc] %v117_v6  ;;  %v159_v11 = vrot.slane %v154_v7, 4  ;;  %v160_v12 = vrot.slane %v1663_v8, 4  ;;  %557 = vmatprep.subr.bf16.mxu0 %v1475_v9 }
  0x95   :  { %558 = vmatpush1.bf16.msra.mxu0 %v1477_v10 }
  0x96   :  { %v162_v13 = vsel %vm66_vm0, %v159_v11, %v160_v12 }
  0x97   :  { %v164_v14 = vsel %vm163_vm8, %v154_v7, %v162_v13  ;;  %v202_v15 = vpop.permute.xlu0 %201  ;;  %v1670_v16 = vpop.permute.xlu1 %203 }
  0x98   :  { %171 = vst [vmem:[#allocation2 + $0x14] sm:$0x33] %v164_v14  ;;  %v207_v17 = vrot.slane %v202_v15, 4  ;;  %v208_v18 = vrot.slane %v1670_v16, 4 }
  0x9a   :  { %v210_v19 = vsel %vm66_vm0, %v207_v17, %v208_v18 }
  0x9b   :  { %v212_v20 = vsel %vm211_vm9, %v202_v15, %v210_v19  ;;  %v428_v21 = vpop.permute.xlu0 %427  ;;  %v286_v22 = vpop.permute.xlu1 %285  ;;  %v445_v46 = vld [vmem:[#allocation2] sm:$0xff]  ;;  %v670_v19 = vsub.s32 0, %v1560_v4 }
  0x9c   :  { %219 = vst [vmem:[#allocation2 + $0x14] sm:$0xcc] %v212_v20  ;;  %v431_v23 = vrot.slane %v428_v21, 4  ;;  %v289_v24 = vrot.slane %v286_v22, 4  ;;  %v674_v20 = vsub.s32 1, %v1560_v4 }
  0x9e   :  { %v435_v26 = vsel %vm66_vm0, %v430_v36, %v431_v23  ;;  %v437_v27 = vsel %vm433_vm1, %v428_v21, %v431_v23  ;;  %v293_v28 = vsel %vm66_vm0, %v288_v37, %v289_v24  ;;  %v295_v29 = vsel %vm291_vm2, %v286_v22, %v289_v24  ;;  %v30_v21 = vld [vmem:[%s1955_s1] sm:$0x1f] }
  0x9f   :  { %v436_v30 = vsel %vm433_vm1, %v1619_v32, %v435_v26  ;;  %443 = vst [vmem:[#allocation2 + $0x60] sm:$0x3] %v437_v27  ;;  %v294_v31 = vsel %vm291_vm2, %v1621_v33, %v293_v28  ;;  %301 = vst [vmem:[#allocation2 + $0x38] sm:$0xc] %v295_v29  ;;  %v333_v34 = vpop.permute.xlu0 %332  ;;  %v381_v35 = vpop.permute.xlu1 %380  ;;  %v1750_v24 = vrot.slane %v30_v21, %v670_v19  ;;  %v678_v27 = vsub.s32 2, %v1560_v4 }
  0xa0   :  { %442 = vst [vmem:[#allocation2 + $0x58] sm:$0x33] %v436_v30  ;;  %300 = vst [vmem:[#allocation2 + $0x30] sm:$0xcc] %v294_v31  ;;  %v336_v36 = vrot.slane %v333_v34, 4  ;;  %v384_v38 = vrot.slane %v381_v35, 4  ;;  %v1752_v26 = vrot.slane %v30_v21, %v674_v20 }
  0xa1   :  { %v682_v30 = vsub.s32 3, %v1560_v4 }
  0xa2   :  { %v340_v37 = vsel %vm66_vm0, %v335_v45, %v336_v36  ;;  %v342_v39 = vsel %vm338_vm3, %v333_v34, %v336_v36  ;;  %v388_v32 = vsel %vm66_vm0, %v383_v51, %v384_v38  ;;  %v390_v40 = vsel %vm386_vm4, %v381_v35, %v384_v38 }
  0xa3   :  { %v341_v33 = vsel %vm338_vm3, %v1633_v43, %v340_v37  ;;  %348 = vst [vmem:[#allocation2 + $0x4c] sm:$0x3] %v342_v39  ;;  %v389_v41 = vsel %vm386_vm4, %v1640_v49, %v388_v32  ;;  %396 = vst [vmem:[#allocation2 + $0x4c] sm:$0xc] %v390_v40  ;;  %v62_v42 = vpop.permute.xlu0 %61  ;;  %v111_v44 = vpop.permute.xlu1 %110  ;;  %v448_v45 = vld [vmem:[#allocation2 + $0x14] sm:$0xff]  ;;  %v1763_v34 = vrot.slane %v30_v21, %v678_v27 }
  0xa4   :  { %v1478_v47 = vld [vmem:[#allocation2 + $0x4] ss:$20 sps:$4 sm:$0xff]   ;;  %347 = vst [vmem:[#allocation2 + $0x44] sm:$0x33] %v341_v33  ;;  %395 = vst [vmem:[#allocation2 + $0x44] sm:$0xcc] %v389_v41  ;;  %v1361_v51 = vcombine.low %v445_v46, %v448_v45  ;;  %v1765_v37 = vrot.slane %v30_v21, %v682_v30 }
  0xa5   :  { %v65_v48 = vrot.slane %v62_v42, 4  ;;  %v114_v50 = vrot.slane %v111_v44, 4  ;;  %559 = vmatprep.subr.bf16.mxu0 %v1478_v47  ;;  %v444_v43 = vld [vmem:[%s1954_s2] sm:$0xf] }
  0xa6   :  { %560 = vmatpush1.bf16.msra.mxu0 %v1361_v51  ;;  %v1482_v56 = vld [vmem:[#allocation2 + $0x60] ss:$0 sps:$4 sm:$0x33]  }
  0xa7   :  { %v70_v49 = vsel %vm66_vm0, %v64_v58, %v65_v48  ;;  %v72_v52 = vsel %vm68_vm5, %v62_v42, %v65_v48  ;;  %v118_v53 = vsel %vm66_vm0, %v113_v3, %v114_v50  ;;  %v120_v54 = vsel %vm116_vm7, %v111_v44, %v114_v50  ;;  %v158_v60 = vpop.permute.xlu0 %157  ;;  %v206_v58 = vpop.permute.xlu1 %205  ;;  %v458_v61 = vld [vmem:[#allocation2 + $0x58] sm:$0x33]  ;;  %1427 = vmatprep.subr.bf16.mxu0 %v1510_v62 }
  0xa8   :  { %v71_v57 = vsel %vm68_vm5, %v1647_v55, %v70_v49  ;;  %78 = vst [vmem:[#allocation2 + $0x10] sm:$0x3] %v72_v52  ;;  %v119_v59 = vsel %vm116_vm7, %v1656_v1, %v118_v53  ;;  %126 = vst [vmem:[#allocation2 + $0x10] sm:$0xc] %v120_v54  ;;  %v161_v63 = vrot.slane %v158_v60, 4  ;;  %v209_v0 = vrot.slane %v206_v58, 4 }
  0xa9   :  { %77 = vst [vmem:[#allocation2 + $0x8] sm:$0x33] %v71_v57  ;;  %125 = vst [vmem:[#allocation2 + $0x8] sm:$0xcc] %v119_v59  ;;  %v1374_v2 = vcombine.high %v458_v61, %v458_v61  ;;  %v1373_v3 = vcombine.low %v458_v61, %v458_v61  ;;  %1377 = vmatmul.mubr.msk.bf16.vlgmr.msra.gmra.mxu0 %vm525_vm10, %v444_v43  ;;  %v543_v55 = vsel %vm529_vm6, %v1482_v56, 0 }
  0xaa   :  { %v165_v1 = vsel %vm66_vm0, %v160_v12, %v161_v63  ;;  %v167_v5 = vsel %vm163_vm8, %v158_v60, %v161_v63  ;;  %v213_v6 = vsel %vm66_vm0, %v208_v18, %v209_v0  ;;  %v215_v7 = vsel %vm211_vm9, %v206_v58, %v209_v0  ;;  %1428 = vmatpush3.bf16.msra.mxu0 %v543_v55  ;;  %v722_v55 = vld [vmem:[%s1956_s3] sm:$0xff] }
  0xab   :  { %1378 = vmatprep.subr.msk.bf16.mxu1 %vm529_vm6, %v1374_v2  ;;  %v166_v9 = vsel %vm163_vm8, %v1663_v8, %v165_v1  ;;  %173 = vst [vmem:[#allocation2 + $0x24] sm:$0x3] %v167_v5  ;;  %v214_v10 = vsel %vm211_vm9, %v1670_v16, %v213_v6  ;;  %221 = vst [vmem:[#allocation2 + $0x24] sm:$0xc] %v215_v7  ;;  %v537_v11 = vsel %vm529_vm6, %v1373_v3, 0  ;;  %1433 = vmatprep.mubr.msk.bf16.mxu0 %vm1511_vm11, %v1510_v62  ;;  %v724_v6 = vld [vmem:[%s1957_s4] sm:$0xff] }
  0xac   :  { %v1483_v12 = vld [vmem:[#allocation2 + $0x34] ss:$20 sps:$4 sm:$0xff]   ;;  %172 = vst [vmem:[#allocation2 + $0x1c] sm:$0x33] %v166_v9  ;;  %220 = vst [vmem:[#allocation2 + $0x1c] sm:$0xcc] %v214_v10  ;;  %597 = vmatpush1.bf16.msra.mxu1 %v537_v11  ;;  %1429 = vmatprep.subr.bf16.mxu0 %v1510_v62 }
  0xad   :  { %598 = vmatprep.subr.bf16.mxu1 %v1483_v12  ;;  %v1486_v8 = vld [vmem:[#allocation2 + $0x38] ss:$20 sps:$4 sm:$0xff]   ;;  %v1485_v13 = vld [vmem:[#allocation2 + $0x30] ss:$20 sps:$4 sm:$0xff]  }
  0xae   :  { %1430 = vmatpush3.bf16.msra.mxu0 %v1486_v8 }
  0xaf   :  { %1431 = vmatprep.subr.bf16.mxu0 %v1510_v62 }
  0xb0   :  { %599 = vmatpush1.bf16.msra.mxu1 %v1485_v13 }
  0xb2   :  { %v1487_v14 = vld [vmem:[#allocation2 + $0x10] ss:$20 sps:$4 sm:$0xff]  }
  0xb3   :  { %v1488_v15 = vld [vmem:[#allocation2 + $0xc] ss:$20 sps:$4 sm:$0xff]   ;;  %v1490_v16 = vld [vmem:[#allocation2 + $0x8] ss:$20 sps:$4 sm:$0xff]   ;;  %1432 = vmatpush3.bf16.msra.mxu0 %v1487_v14 }
  0xb4   :  { %600 = vmatprep.subr.bf16.mxu1 %v1488_v15 }
  0xb5   :  { %601 = vmatpush1.bf16.msra.mxu1 %v1490_v16 }
  0xb6   :  { %1434 = vmatmul.mubr.msk.bf16.vlgmr.msra.gmra.mxu0 %vm525_vm10, %v444_v43 }
  0xb7   :  { %1237 = vmatprep.mubr.bf16.mxu0 %v1509_v25 }
  0xb8   :  { %1379 = vmatmul.mubr.msk.bf16.vlgmr.msra.gmra.mxu1 %vm525_vm10, %v444_v43 }
  0xb9   :  { %1196 = vmatprep.mubr.bf16.mxu1 %v1509_v25  ;;  %v686_v25 = vsub.s32 4, %v1560_v4 }
  0xbb   :  { %v1761_v31 = vrot.slane %v30_v21, %v686_v25 }
 0x169   :  { %v1741_v17 = vpop.f32.mrf.mxu0 }
 0x16a   :  { %v693_v28 = vmul.f32 %v1750_v24, %v1741_v17 }
 0x16b   :  { %v1743_v18 = vpop.f32.mrf.mxu0 }
 0x16c   :  { %v694_v29 = vmul.f32 %v1752_v26, %v1743_v18  ;;  %v705_v36 = vmul.f32 %v693_v28, %v693_v28 }
 0x16d   :  { %v583_v22 = vpop.f32.mrf.mxu0 }
 0x16e   :  { %v706_v38 = vmul.f32 %v694_v29, %v694_v29  ;;  %v698_v40 = vadd.f32 %v694_v29, %v693_v28 }
 0x16f   :  { %v584_v23 = vpop.f32.mrf.mxu0 }
 0x170   :  { %v710_v46 = vadd.f32 %v706_v38, %v705_v36 }
 0x176   :  { %v661_v35 = vpop.f32.mrf.mxu0 }
 0x177   :  { %v697_v33 = vmul.f32 %v1761_v31, %v661_v35 }
 0x178   :  { %v620_v39 = vpop.f32.mrf.mxu1  ;;  %v1435_v32 = vpop.f32.mrf.mxu0 }
 0x179   :  { %v695_v41 = vmul.f32 %v1763_v34, %v620_v39  ;;  %v709_v49 = vmul.f32 %v697_v33, %v697_v33 }
 0x17a   :  { %v622_v42 = vpop.f32.mrf.mxu1  ;;  %v664_v44 = vpop.f32.mrf.mxu0 }
 0x17b   :  { %v699_v4 = vadd.f32 %v698_v40, %v695_v41  ;;  %v707_v45 = vmul.f32 %v695_v41, %v695_v41  ;;  %v696_v47 = vmul.f32 %v1765_v37, %v622_v42 }
 0x17c   :  { %v624_v48 = vpop.f32.mrf.mxu1  ;;  %v1436_v50 = vpop.f32.mrf.mxu0 }
 0x17d   :  { %v708_v51 = vmul.f32 %v696_v47, %v696_v47  ;;  %v700_v43 = vadd.f32 %v699_v4, %v696_v47  ;;  %v711_v52 = vadd.f32 %v710_v46, %v707_v45 }
 0x17e   :  { %v625_v53 = vpop.f32.mrf.mxu1 }
 0x17f   :  { %v701_v54 = vadd.f32 %v700_v43, %v697_v33  ;;  %v712_v56 = vadd.f32 %v711_v52, %v708_v51 }
 0x181   :  { %702 = vadd.xlane.f32.xlu0 %v701_v54  ;;  %v713_v57 = vadd.f32 %v712_v56, %v709_v49 }
 0x183   :  { %714 = vadd.xlane.f32.xlu1 %v713_v57 }
 0x20a   :  { %v703_v59 = vpop.xlane.xlu0 %702 }
 0x20b   :  { %v704_v60 = vmul.f32 0.001953125, %v703_v59 }
 0x20c   :  { %v715_v58 = vpop.xlane.xlu1 %714 }
 0x20d   :  { %v717_v61 = vmul.f32 %v704_v60, %v704_v60  ;;  %v716_v63 = vmul.f32 0.001953125, %v715_v58 }
 0x20f   :  { %v718_v0 = vsub.f32 %v716_v63, %v717_v61 }
 0x211   :  { %v719_v2 = vmax.f32 %v718_v0, 0.0 }
 0x213   :  { %v720_v3 = vadd.f32 1e-05, %v719_v2 }
 0x215   :  { %1496 = vrsqrt.f32 %v720_v3 }
 0x222   :  { %v1497_v1 = vpop.eup %1496 }
 0x223   :  { %v723_v5 = vmul.f32 %v1497_v1, %v722_v55 }
 0x225   :  { %729 = vperm.xlu0 %1463, %v723_v5   ;;  %v725_v7 = vmul.f32 %v723_v5, %v704_v60 }
 0x227   :  { %v726_v9 = vsub.f32 %v724_v6, %v725_v7 }
 0x229   :  { %739 = vperm.xlu1 %1464, %v726_v9  }
 0x2a0   :  { %v730_v10 = vpop.permute.xlu0 %729 }
 0x2a1   :  { %v732_v11 = vmul.f32 %v730_v10, %v1741_v17  ;;  %v733_v12 = vmul.f32 %v730_v10, %v1743_v18  ;;  %v734_v8 = vmul.f32 %v730_v10, %v620_v39  ;;  %v735_v13 = vmul.f32 %v730_v10, %v622_v42 }
 0x2a2   :  { %v736_v14 = vmul.f32 %v730_v10, %v661_v35 }
 0x2a4   :  { %v740_v15 = vpop.permute.xlu1 %739 }
 0x2a5   :  { %v742_v16 = vadd.f32 %v740_v15, %v732_v11  ;;  %v743_v19 = vadd.f32 %v740_v15, %v733_v12  ;;  %v744_v20 = vadd.f32 %v740_v15, %v734_v8  ;;  %v745_v21 = vadd.f32 %v740_v15, %v735_v13 }
 0x2a6   :  { %v746_v22 = vadd.f32 %v740_v15, %v736_v14 }
 0x2a7   :  { %v747_v23 = vmax.f32 %v742_v16, 0.0  ;;  %v748_v25 = vmax.f32 %v743_v19, 0.0  ;;  %v749_v27 = vmax.f32 %v744_v20, 0.0  ;;  %v750_v28 = vmax.f32 %v745_v21, 0.0 }
 0x2a8   :  { %v751_v29 = vmax.f32 %v746_v22, 0.0 }
 0x2a9   :  { %v752_v30 = vmul.f32 %v747_v23, %v1750_v24  ;;  %v753_v17 = vmul.f32 %v748_v25, %v1752_v26  ;;  %v754_v18 = vmul.f32 %v749_v27, %v1763_v34  ;;  %v755_v36 = vmul.f32 %v750_v28, %v1765_v37 }
 0x2aa   :  { %v756_v35 = vmul.f32 %v751_v29, %v1761_v31 }
 0x2ab   :  { %v1783_v38 = vpack.c.bf16 %v753_v17, %v752_v30  ;;  %v1785_v39 = vpack.c.bf16 %v755_v36, %v754_v18 }
 0x2ac   :  { %v1416_v32 = vpack.c.bf16 %v756_v35, %v756_v35 }
 0x2ad   :  { %782 = vst [vmem:[#allocation3 + $0x4] sm:$0xff] %v1783_v38  ;;  %783 = vst [vmem:[#allocation3 + $0xc] sm:$0xff] %v1785_v39  ;;  %979 = vrot.lane.b32.xlu1 %v1783_v38, %s1501_s29  ;;  %901 = vrot.lane.b32.xlu0 %v1783_v38, %s1502_s30 }
 0x2ae   :  { %784 = vst [vmem:[#allocation3 + $0x14] sm:$0xf] %v1416_v32 }
 0x2b1   :  { %981 = vrot.lane.b32.xlu1 %v1785_v39, %s1501_s29 }
 0x2b4   :  { %v837_v40 = vld [vmem:[#allocation3] sm:$0xff]  ;;  %v838_v42 = vld [vmem:[#allocation3 + $0x8] sm:$0xff] }
 0x2b5   :  { %843 = vrot.lane.b32.xlu0 %v837_v40, %s1507_s17  ;;  %927 = vrot.lane.b32.xlu1 %v1783_v38, %s1503_s11  ;;  %v891_v33 = vld [vmem:[#allocation3 + $0x14] sm:$0xf] }
 0x2b6   :  { %894 = vst [vmem:[#allocation4 + $0x60] sm:$0xf] %v891_v33  ;;  %v975_v41 = vld [vmem:[#allocation3 + $0x14] sm:$0xff] }
 0x2b7   :  { %v839_v44 = vld [vmem:[#allocation3 + $0x10] sm:$0xff] }
 0x2b9   :  { %869 = vrot.lane.b32.xlu0 %v837_v40, %s1508_s20  ;;  %929 = vrot.lane.b32.xlu1 %v1785_v39, %s1503_s11 }
 0x2bd   :  { %791 = vrot.lane.b32.xlu0 %v837_v40, %s1505_s13  ;;  %953 = vrot.lane.b32.xlu1 %v1783_v38, %s1504_s12 }
 0x2c1   :  { %817 = vrot.lane.b32.xlu0 %v837_v40, %s1506_s14  ;;  %955 = vrot.lane.b32.xlu1 %v1785_v39, %s1504_s12 }
 0x2c5   :  { %983 = vrot.lane.b32.xlu0 %v975_v41, %s1501_s29  ;;  %903 = vrot.lane.b32.xlu1 %v1785_v39, %s1502_s30 }
 0x2c9   :  { %957 = vrot.lane.b32.xlu0 %v975_v41, %s1504_s12  ;;  %845 = vrot.lane.b32.xlu1 %v838_v42, %s1507_s17 }
 0x2cd   :  { %847 = vrot.lane.b32.xlu0 %v839_v44, %s1507_s17  ;;  %871 = vrot.lane.b32.xlu1 %v838_v42, %s1508_s20 }
 0x2d1   :  { %795 = vrot.lane.b32.xlu0 %v839_v44, %s1505_s13  ;;  %793 = vrot.lane.b32.xlu1 %v838_v42, %s1505_s13 }
 0x2d5   :  { %819 = vrot.lane.b32.xlu1 %v838_v42, %s1506_s14 }
 0x2d9   :  { %931 = vrot.lane.b32.xlu1 %v975_v41, %s1503_s11 }
 0x2dd   :  { %905 = vrot.lane.b32.xlu1 %v975_v41, %s1502_s30 }
 0x2e1   :  { %873 = vrot.lane.b32.xlu1 %v839_v44, %s1508_s20 }
 0x2e5   :  { %821 = vrot.lane.b32.xlu1 %v839_v44, %s1506_s14 }
 0x31f   :  { %v980_v46 = vpop.permute.xlu1 %979  ;;  %v902_v4 = vpop.permute.xlu0 %901 }
 0x320   :  { %v985_v47 = vrot.slane %v980_v46, 4  ;;  %v907_v6 = vrot.slane %v902_v4, 4 }
 0x323   :  { %v982_v45 = vpop.permute.xlu1 %981 }
 0x324   :  { %v986_v48 = vrot.slane %v982_v45, 4 }
 0x326   :  { %v988_v50 = vsel %vm66_vm0, %v985_v47, %v986_v48 }
 0x327   :  { %v989_v51 = vsel %vm433_vm1, %v980_v46, %v988_v50  ;;  %v844_v43 = vpop.permute.xlu0 %843  ;;  %v928_v49 = vpop.permute.xlu1 %927 }
 0x328   :  { %v1405_v52 = vcombine.high %v989_v51, %v989_v51  ;;  %v1404_v53 = vcombine.low %v989_v51, %v989_v51  ;;  %v933_v59 = vrot.slane %v928_v49, 4  ;;  %v849_v19 = vrot.slane %v844_v43, 4 }
 0x32a   :  { %1409 = vmatprep.subr.msk.bf16.mxu1 %vm66_vm0, %v1405_v52  ;;  %v1150_v54 = vsel %vm66_vm0, %v1404_v53, 0 }
 0x32b   :  { %v870_v56 = vpop.permute.xlu0 %869  ;;  %v1825_v57 = vpop.permute.xlu1 %929  ;;  %1171 = vmatpush1.bf16.msra.mxu1 %v1150_v54 }
 0x32c   :  { %v934_v60 = vrot.slane %v1825_v57, 4 }
 0x32e   :  { %v936_v58 = vsel %vm66_vm0, %v933_v59, %v934_v60 }
 0x32f   :  { %v937_v61 = vsel %vm338_vm3, %v928_v49, %v936_v58  ;;  %v1832_v63 = vpop.permute.xlu0 %791  ;;  %v954_v0 = vpop.permute.xlu1 %953 }
 0x330   :  { %v959_v55 = vrot.slane %v954_v0, 4 }
 0x333   :  { %v1834_v2 = vpop.permute.xlu0 %817  ;;  %v956_v3 = vpop.permute.xlu1 %955 }
 0x334   :  { %v960_v1 = vrot.slane %v956_v3, 4 }
 0x336   :  { %v962_v5 = vsel %vm66_vm0, %v959_v55, %v960_v1 }
 0x337   :  { %v963_v7 = vsel %vm386_vm4, %v954_v0, %v962_v5  ;;  %v984_v9 = vpop.permute.xlu0 %983  ;;  %v1838_v10 = vpop.permute.xlu1 %903 }
 0x338   :  { %v987_v11 = vrot.slane %v984_v9, 4  ;;  %v908_v12 = vrot.slane %v1838_v10, 4  ;;  %v1399_v8 = vcombine.low %v937_v61, %v963_v7  ;;  %v1400_v13 = vcombine.high %v937_v61, %v963_v7 }
 0x33a   :  { %v990_v14 = vsel %vm66_vm0, %v986_v48, %v987_v11  ;;  %v992_v15 = vsel %vm433_vm1, %v984_v9, %v987_v11  ;;  %v910_v16 = vsel %vm66_vm0, %v907_v6, %v908_v12  ;;  %1172 = vmatprep.subr.bf16.mxu1 %v1400_v13  ;;  %v797_v48 = vrot.slane %v1832_v63, 4 }
 0x33b   :  { %v991_v20 = vsel %vm433_vm1, %v982_v45, %v990_v14  ;;  %998 = vst [vmem:[#allocation4 + $0xb0] sm:$0xf] %v992_v15  ;;  %v911_v21 = vsel %vm291_vm2, %v902_v4, %v910_v16  ;;  %v958_v22 = vpop.permute.xlu0 %957  ;;  %v846_v23 = vpop.permute.xlu1 %845  ;;  %1173 = vmatpush1.bf16.msra.mxu1 %v1399_v8 }
 0x33c   :  { %v961_v25 = vrot.slane %v958_v22, 4  ;;  %v850_v27 = vrot.slane %v846_v23, 4  ;;  %v1407_v28 = vcombine.high %v991_v20, %v991_v20  ;;  %v1406_v29 = vcombine.low %v991_v20, %v991_v20 }
 0x33d   :  { %v1394_v30 = vcombine.low %v1783_v38, %v911_v21  ;;  %v1395_v17 = vcombine.high %v1783_v38, %v911_v21  ;;  %v875_v38 = vrot.slane %v870_v56, 4 }
 0x33e   :  { %v964_v18 = vsel %vm66_vm0, %v960_v1, %v961_v25  ;;  %v966_v36 = vsel %vm386_vm4, %v958_v22, %v961_v25  ;;  %v852_v35 = vsel %vm66_vm0, %v849_v19, %v850_v27  ;;  %1411 = vmatprep.subr.msk.bf16.mxu0 %vm66_vm0, %v1407_v28  ;;  %v1156_v32 = vsel %vm66_vm0, %v1406_v29, 0 }
 0x33f   :  { %v1856_v40 = vsel %vm386_vm4, %v956_v3, %v964_v18  ;;  %972 = vst [vmem:[#allocation4 + $0x9c] sm:$0xf] %v966_v36  ;;  %v853_v33 = vsel %vm163_vm8, %v844_v43, %v852_v35  ;;  %v848_v41 = vpop.permute.xlu0 %847  ;;  %v1859_v42 = vpop.permute.xlu1 %871  ;;  %1212 = vmatpush1.bf16.msra.mxu0 %v1156_v32  ;;  %1174 = vmatprep.subr.bf16.mxu1 %v1395_v17  ;;  %v823_v1 = vrot.slane %v1834_v2, 4 }
 0x340   :  { %v851_v44 = vrot.slane %v848_v41, 4  ;;  %v876_v46 = vrot.slane %v1859_v42, 4  ;;  %1175 = vmatpush1.bf16.msra.mxu1 %v1394_v30 }
 0x342   :  { %v854_v4 = vsel %vm66_vm0, %v850_v27, %v851_v44  ;;  %v856_v45 = vsel %vm163_vm8, %v848_v41, %v851_v44  ;;  %v878_v47 = vsel %vm66_vm0, %v875_v38, %v876_v46  ;;  %v1491_v15 = vld [vmem:[#allocation4 + $0xb0] ss:$0 sps:$4 sm:$0xff]  }
 0x343   :  { %v1869_v50 = vsel %vm163_vm8, %v846_v23, %v854_v4  ;;  %862 = vst [vmem:[#allocation4 + $0x38] sm:$0xf] %v856_v45  ;;  %v879_v51 = vsel %vm211_vm9, %v870_v56, %v878_v47  ;;  %v796_v43 = vpop.permute.xlu0 %795  ;;  %v794_v49 = vpop.permute.xlu1 %793  ;;  %v1162_v23 = vsel %vm66_vm0, %v1491_v15, 0 }
 0x344   :  { %v799_v52 = vrot.slane %v796_v43, 4  ;;  %v798_v53 = vrot.slane %v794_v49, 4  ;;  %v1389_v54 = vcombine.low %v853_v33, %v879_v51  ;;  %v1390_v59 = vcombine.high %v853_v33, %v879_v51 }
 0x346   :  { %v804_v58 = vsel %vm68_vm5, %v796_v43, %v799_v52  ;;  %v800_v61 = vsel %vm66_vm0, %v797_v48, %v798_v53  ;;  %v802_v0 = vsel %vm66_vm0, %v798_v53, %v799_v52  ;;  %1176 = vmatprep.subr.bf16.mxu1 %v1390_v59 }
 0x347   :  { %810 = vst [vmem:[#allocation4 + $0x10] sm:$0xf] %v804_v58  ;;  %v801_v3 = vsel %vm68_vm5, %v1832_v63, %v800_v61  ;;  %v1878_v55 = vsel %vm68_vm5, %v794_v49, %v802_v0  ;;  %v820_v56 = vpop.permute.xlu1 %819  ;;  %1177 = vmatpush1.bf16.msra.mxu1 %v1389_v54 }
 0x348   :  { %v824_v5 = vrot.slane %v820_v56, 4 }
 0x34a   :  { %v826_v6 = vsel %vm66_vm0, %v823_v1, %v824_v5 }
 0x34b   :  { %v827_v7 = vsel %vm116_vm7, %v1834_v2, %v826_v6  ;;  %v932_v9 = vpop.permute.xlu1 %931  ;;  %v999_v2 = vld [vmem:[%s1958_s5] sm:$0xf] }
 0x34c   :  { %v935_v11 = vrot.slane %v932_v9, 4  ;;  %v1384_v8 = vcombine.low %v801_v3, %v827_v7  ;;  %v1385_v13 = vcombine.high %v801_v3, %v827_v7 }
 0x34e   :  { %v938_v63 = vsel %vm66_vm0, %v934_v60, %v935_v11  ;;  %v940_v14 = vsel %vm338_vm3, %v932_v9, %v935_v11  ;;  %1178 = vmatprep.subr.bf16.mxu1 %v1385_v13 }
 0x34f   :  { %v939_v16 = vsel %vm338_vm3, %v1825_v57, %v938_v63  ;;  %946 = vst [vmem:[#allocation4 + $0x88] sm:$0xf] %v940_v14  ;;  %v906_v19 = vpop.permute.xlu1 %905  ;;  %1179 = vmatpush1.bf16.msra.mxu1 %v1384_v8 }
 0x350   :  { %v909_v20 = vrot.slane %v906_v19, 4  ;;  %v1401_v21 = vcombine.low %v939_v16, %v1856_v40  ;;  %v1402_v60 = vcombine.high %v939_v16, %v1856_v40  ;;  %1437 = vmatprep.subr.bf16.mxu1 %v1510_v62 }
 0x352   :  { %v912_v22 = vsel %vm66_vm0, %v908_v12, %v909_v20  ;;  %v914_v57 = vsel %vm291_vm2, %v906_v19, %v909_v20  ;;  %1410 = vmatmul.mubr.msk.bf16.vlgmr.msra.gmra.mxu1 %vm1144_vm12, %v999_v2  ;;  %1213 = vmatprep.subr.bf16.mxu0 %v1402_v60 }
 0x353   :  { %v913_v25 = vsel %vm291_vm2, %v1838_v10, %v912_v22  ;;  %920 = vst [vmem:[#allocation4 + $0x74] sm:$0xf] %v914_v57  ;;  %v874_v27 = vpop.permute.xlu1 %873  ;;  %1214 = vmatpush1.bf16.msra.mxu0 %v1401_v21  ;;  %1438 = vmatpush3.bf16.msra.mxu1 %v1162_v23  ;;  %v1317_v57 = vld [vmem:[%s1960_s7] sm:$0xff] }
 0x354   :  { %v877_v28 = vrot.slane %v874_v27, 4  ;;  %v1396_v29 = vcombine.low %v1785_v39, %v913_v25  ;;  %v1397_v30 = vcombine.high %v1785_v39, %v913_v25  ;;  %1439 = vmatprep.subr.bf16.mxu1 %v1510_v62  ;;  %1447 = vmatprep.mubr.msk.bf16.mxu1 %vm1511_vm11, %v1510_v62 }
 0x356   :  { %v880_v12 = vsel %vm66_vm0, %v876_v46, %v877_v28  ;;  %v882_v10 = vsel %vm211_vm9, %v874_v27, %v877_v28  ;;  %1215 = vmatprep.subr.bf16.mxu0 %v1397_v30  ;;  %v1492_v17 = vld [vmem:[#allocation4 + $0x88] ss:$20 sps:$4 sm:$0xff]  }
 0x357   :  { %v881_v18 = vsel %vm211_vm9, %v1859_v42, %v880_v12  ;;  %888 = vst [vmem:[#allocation4 + $0x4c] sm:$0xf] %v882_v10  ;;  %v822_v36 = vpop.permute.xlu1 %821  ;;  %1216 = vmatpush1.bf16.msra.mxu0 %v1396_v29  ;;  %1440 = vmatpush3.bf16.msra.mxu1 %v1492_v17 }
 0x358   :  { %v825_v39 = vrot.slane %v822_v36, 4  ;;  %v1391_v35 = vcombine.low %v1869_v50, %v881_v18  ;;  %v1392_v32 = vcombine.high %v1869_v50, %v881_v18  ;;  %1441 = vmatprep.subr.bf16.mxu1 %v1510_v62 }
 0x35a   :  { %v828_v40 = vsel %vm66_vm0, %v824_v5, %v825_v39  ;;  %v830_v33 = vsel %vm116_vm7, %v822_v36, %v825_v39  ;;  %1217 = vmatprep.subr.bf16.mxu0 %v1392_v32  ;;  %v1493_v41 = vld [vmem:[#allocation4 + $0x60] ss:$20 sps:$4 sm:$0xff]  }
 0x35b   :  { %v829_v38 = vsel %vm116_vm7, %v820_v56, %v828_v40  ;;  %836 = vst [vmem:[#allocation4 + $0x24] sm:$0xf] %v830_v33  ;;  %1218 = vmatpush1.bf16.msra.mxu0 %v1391_v35  ;;  %1442 = vmatpush3.bf16.msra.mxu1 %v1493_v41 }
 0x35c   :  { %v1386_v42 = vcombine.low %v1878_v55, %v829_v38  ;;  %v1387_v44 = vcombine.high %v1878_v55, %v829_v38  ;;  %1443 = vmatprep.subr.bf16.mxu1 %v1510_v62 }
 0x35e   :  { %1219 = vmatprep.subr.bf16.mxu0 %v1387_v44  ;;  %v1494_v46 = vld [vmem:[#allocation4 + $0x38] ss:$20 sps:$4 sm:$0xff]  }
 0x35f   :  { %1220 = vmatpush1.bf16.msra.mxu0 %v1386_v42  ;;  %1444 = vmatpush3.bf16.msra.mxu1 %v1494_v46 }
 0x360   :  { %1445 = vmatprep.subr.bf16.mxu1 %v1510_v62 }
 0x362   :  { %1412 = vmatmul.mubr.msk.bf16.vlgmr.msra.gmra.mxu0 %vm1144_vm12, %v999_v2  ;;  %v1495_v4 = vld [vmem:[#allocation4 + $0x10] ss:$20 sps:$4 sm:$0xff]  }
 0x363   :  { %1446 = vmatpush3.bf16.msra.mxu1 %v1495_v4 }
 0x366   :  { %1448 = vmatmul.mubr.msk.bf16.vlgmr.msra.gmra.mxu1 %vm1144_vm12, %v999_v2 }
 0x412   :  { %v1198_v45 = vpop.f32.mrf.mxu1 }
 0x413   :  { %v1286_v51 = vmul.f32 %v1198_v45, %v1750_v24 }
 0x414   :  { %v1200_v47 = vpop.f32.mrf.mxu1 }
 0x415   :  { %v1287_v43 = vmul.f32 %v1200_v47, %v1752_v26  ;;  %v1298_v49 = vmul.f32 %v1286_v51, %v1286_v51 }
 0x416   :  { %v1202_v48 = vpop.f32.mrf.mxu1 }
 0x417   :  { %v1299_v52 = vmul.f32 %v1287_v43, %v1287_v43  ;;  %v1291_v54 = vadd.f32 %v1287_v43, %v1286_v51 }
 0x418   :  { %v1203_v50 = vpop.f32.mrf.mxu1 }
 0x419   :  { %v1303_v58 = vadd.f32 %v1299_v52, %v1298_v49 }
 0x422   :  { %v1239_v53 = vpop.f32.mrf.mxu0 }
 0x423   :  { %v1288_v62 = vmul.f32 %v1239_v53, %v1763_v34 }
 0x424   :  { %v1241_v59 = vpop.f32.mrf.mxu0 }
 0x425   :  { %v1292_v61 = vadd.f32 %v1291_v54, %v1288_v62  ;;  %v1300_v0 = vmul.f32 %v1288_v62, %v1288_v62  ;;  %v1289_v3 = vmul.f32 %v1241_v59, %v1765_v37 }
 0x426   :  { %v1243_v55 = vpop.f32.mrf.mxu0  ;;  %v1280_v1 = vpop.f32.mrf.mxu1 }
 0x427   :  { %v1301_v56 = vmul.f32 %v1289_v3, %v1289_v3  ;;  %v1293_v5 = vadd.f32 %v1292_v61, %v1289_v3  ;;  %v1304_v6 = vadd.f32 %v1303_v58, %v1300_v0  ;;  %v1290_v24 = vmul.f32 %v1280_v1, %v1761_v31  ;;  %v1315_v31 = vld [vmem:[%s1959_s6] sm:$0xff] }
 0x428   :  { %v1244_v26 = vpop.f32.mrf.mxu0  ;;  %v1449_v7 = vpop.f32.mrf.mxu1 }
 0x429   :  { %v1305_v9 = vadd.f32 %v1304_v6, %v1301_v56  ;;  %v1294_v11 = vadd.f32 %v1293_v5, %v1290_v24  ;;  %v1302_v8 = vmul.f32 %v1290_v24, %v1290_v24 }
 0x42a   :  { %v1283_v13 = vpop.f32.mrf.mxu1 }
 0x42b   :  { %1295 = vadd.xlane.f32.xlu0 %v1294_v11  ;;  %v1306_v34 = vadd.f32 %v1305_v9, %v1302_v8 }
 0x42c   :  { %v1450_v63 = vpop.f32.mrf.mxu1 }
 0x42d   :  { %1307 = vadd.xlane.f32.xlu1 %v1306_v34 }
 0x4b4   :  { %v1296_v14 = vpop.xlane.xlu0 %1295 }
 0x4b5   :  { %v1297_v15 = vmul.f32 0.001953125, %v1296_v14 }
 0x4b6   :  { %v1308_v37 = vpop.xlane.xlu1 %1307 }
 0x4b7   :  { %v1310_v16 = vmul.f32 %v1297_v15, %v1297_v15  ;;  %v1309_v19 = vmul.f32 0.001953125, %v1308_v37 }
 0x4b9   :  { %v1311_v2 = vsub.f32 %v1309_v19, %v1310_v16 }
 0x4bb   :  { %v1312_v20 = vmax.f32 %v1311_v2, 0.0 }
 0x4bd   :  { %v1313_v21 = vadd.f32 1e-05, %v1312_v20 }
 0x4bf   :  { %1498 = vrsqrt.f32 %v1313_v21 }
 0x4cc   :  { %v1499_v60 = vpop.eup %1498 }
 0x4cd   :  { %v1316_v22 = vmul.f32 %v1499_v60, %v1315_v31 }
 0x4cf   :  { %1322 = vperm.xlu0 %1463, %v1316_v22   ;;  %v1318_v23 = vmul.f32 %v1316_v22, %v1297_v15 }
 0x4d1   :  { %v1319_v25 = vsub.f32 %v1317_v57, %v1318_v23 }
 0x4d3   :  { %1332 = vperm.xlu1 %1464, %v1319_v25  }
 0x54a   :  { %v1323_v27 = vpop.permute.xlu0 %1322 }
 0x54b   :  { %v1325_v28 = vmul.f32 %v1323_v27, %v1198_v45  ;;  %v1326_v29 = vmul.f32 %v1323_v27, %v1200_v47  ;;  %v1327_v30 = vmul.f32 %v1323_v27, %v1239_v53  ;;  %v1328_v12 = vmul.f32 %v1323_v27, %v1241_v59 }
 0x54c   :  { %v1329_v10 = vmul.f32 %v1323_v27, %v1280_v1 }
 0x54e   :  { %v1333_v17 = vpop.permute.xlu1 %1332 }
 0x54f   :  { %v1335_v18 = vadd.f32 %v1333_v17, %v1325_v28  ;;  %v1336_v36 = vadd.f32 %v1333_v17, %v1326_v29  ;;  %v1337_v39 = vadd.f32 %v1333_v17, %v1327_v30  ;;  %v1338_v35 = vadd.f32 %v1333_v17, %v1328_v12 }
 0x550   :  { %v1339_v32 = vadd.f32 %v1333_v17, %v1329_v10 }
 0x551   :  { %v1340_v40 = vmax.f32 %v1335_v18, 0.0  ;;  %v1341_v33 = vmax.f32 %v1336_v36, 0.0  ;;  %v1342_v41 = vmax.f32 %v1337_v39, 0.0  ;;  %v1343_v38 = vmax.f32 %v1338_v35, 0.0 }
 0x552   :  { %v1344_v42 = vmax.f32 %v1339_v32, 0.0 }
 0x553   :  { %1345 = vst [vmem:[%s1961_s8] sm:$0xff] %v1340_v40  ;;  %1346 = vst [vmem:[%s1961_s8 + $0x8] sm:$0xff] %v1341_v33 }
 0x554   :  { %1347 = vst [vmem:[%s1961_s8 + $0x10] sm:$0xff] %v1342_v41  ;;  %1348 = vst [vmem:[%s1961_s8 + $0x18] sm:$0xff] %v1343_v38 }
 0x555   :  { %1349 = vst [vmem:[%s1961_s8 + $0x20] sm:$0xff] %v1344_v42 }

</bundles_post_ra>
